<compile_context>
chip_gen: v5e
topology: v5e:2x2
jax: 0.10.0
libtpu: 0.0.40
codegen_flags: <defaults>
</compile_context>

<pallas_src>
import jax
import jax.numpy as jnp
from jax.experimental import pallas as pl
from jax.experimental.pallas import tpu as pltpu


def _conv_gelu_kernel(w_ref, p_ref, b_ref, o_ref):
    # w_ref: [Cout, K]  matmul-ready conv weight
    # p_ref: [K,  M]    im2col patches (M = N*Ho*Wo columns)
    # b_ref: [Cout, 1]  conv bias column
    # o_ref: [Cout, M]  fused conv + GELU(tanh) output
    v1 = jnp.dot(w_ref[...], p_ref[...], preferred_element_type=jnp.float32)
    v1 = v1 + b_ref[...]                       # broadcast bias over M (lanes)
    v2 = v1 * 0.5                              # VPU
    v6 = v1 + (v1 * v1 * v1) * 0.044715        # VPU
    v8 = jnp.tanh(v6 * 0.7978845608028654)     # EUP slot (free alongside MXU)
    o_ref[...] = (v2 * (v8 + 1.0)).astype(o_ref.dtype)


def conv2d_gelu_pallas(x, w_mat, bias_col, *, kh=5, kw=5, stride=3, padding=5):
    """x: [N, Cin, H, W]; w_mat: [Cout, Cin*kh*kw]; bias_col: [Cout, 1] -> NCHW."""
    N, Cin, H, W = x.shape
    Cout, K = w_mat.shape
    Ho = (H + 2 * padding - kh) // stride + 1
    Wo = (W + 2 * padding - kw) // stride + 1
    M = N * Ho * Wo

    # im2col as a single XLA op: (N, Cin*kh*kw, Ho, Wo), channels-major
    # (cin, kh, kw) — same flat order as weight.reshape(Cout, Cin*kh*kw).
    patches = jax.lax.conv_general_dilated_patches(
        x.astype(jnp.float32),
        filter_shape=(kh, kw),
        window_strides=(stride, stride),
        padding=((padding, padding), (padding, padding)),
        dimension_numbers=("NCHW", "OIHW", "NCHW"),
    )
    if N == 1:
        P = patches.reshape(K, M)                               # pure reshape
    else:
        P = jnp.transpose(patches, (1, 0, 2, 3)).reshape(K, M)

    out2d = pl.pallas_call(
        _conv_gelu_kernel,
        out_shape=jax.ShapeDtypeStruct((Cout, M), jnp.float32),
        in_specs=[
            pl.BlockSpec(memory_space=pltpu.MemorySpace.VMEM),
            pl.BlockSpec(memory_space=pltpu.MemorySpace.VMEM),
            pl.BlockSpec(memory_space=pltpu.MemorySpace.VMEM),
        ],
        out_specs=pl.BlockSpec(memory_space=pltpu.MemorySpace.VMEM),
        cost_estimate=pl.CostEstimate(
            flops=2 * Cout * K * M,
            transcendentals=Cout * M,
            bytes_accessed=4 * (Cout * K + K * M + Cout + Cout * M)),
    )(w_mat, P, bias_col)

    # (Cout, M) -> NCHW. For N=1 this is a pure reshape (no transpose).
    if N == 1:
        return out2d.reshape(1, Cout, Ho, Wo)
    return jnp.transpose(out2d.reshape(Cout, N, Ho, Wo), (1, 0, 2, 3))


if __name__ == "__main__":
    key = jax.random.PRNGKey(0)
    kx, kw_, kb = jax.random.split(key, 3)

    # Conv2d(10, 52, 5, stride=3, padding=5); input (1, 10, 21, 4) as in the spec.
    x = jax.random.normal(kx, (1, 10, 21, 4), jnp.float32)
    weight = jax.random.normal(kw_, (52, 10, 5, 5), jnp.float32) * 0.1
    bias = jax.random.normal(kb, (52,), jnp.float32) * 0.1

    # Hoisted weight prep: done once, outside the per-call (jitted) path.
    Cout = weight.shape[0]
    K = weight.shape[1] * weight.shape[2] * weight.shape[3]
    w_mat = weight.reshape(Cout, K).astype(jnp.float32)      # (52, 250), no .T
    bias_col = bias.reshape(Cout, 1).astype(jnp.float32)     # (52, 1)

    fwd = jax.jit(conv2d_gelu_pallas)
    out = jax.block_until_ready(fwd(x, w_mat, bias_col))

    # Reference: plain-JAX conv + tanh-GELU chain (matches the PyTorch forward).
    v1 = jax.lax.conv_general_dilated(
        x, weight, window_strides=(3, 3), padding=((5, 5), (5, 5)),
        dimension_numbers=("NCHW", "OIHW", "NCHW")) + bias[None, :, None, None]
    ref = (v1 * 0.5) * (jnp.tanh((v1 + (v1 * v1 * v1) * 0.044715)
                                 * 0.7978845608028654) + 1.0)

    assert out.shape == (1, 52, 9, 4), out.shape
    assert jnp.allclose(out, ref, atol=1e-4, rtol=1e-4), float(
        jnp.max(jnp.abs(out - ref)))
    print("KERNEL_OK")
</pallas_src>

<mosaic_0001>
module attributes {stable_mosaic.version = 11 : i64} {
  func.func @_conv_gelu_kernel(%arg0: memref<52x250xf32, #tpu.memory_space<vmem>>, %arg1: memref<250x36xf32, #tpu.memory_space<vmem>>, %arg2: memref<52x1xf32, #tpu.memory_space<vmem>>, %arg3: memref<52x36xf32, #tpu.memory_space<vmem>>) attributes {dimension_semantics = [], scalar_prefetch = 0 : i64, scratch_operands = 0 : i64, tpu.core_type = #tpu.core_type<tc>} {
    %c0 = arith.constant 0 : index
    %c0_0 = arith.constant 0 : index
    %0 = vector.load %arg0[%c0, %c0_0] : memref<52x250xf32, #tpu.memory_space<vmem>>, vector<52x250xf32>
    %c0_1 = arith.constant 0 : index
    %c0_2 = arith.constant 0 : index
    %1 = vector.load %arg1[%c0_1, %c0_2] : memref<250x36xf32, #tpu.memory_space<vmem>>, vector<250x36xf32>
    %cst = arith.constant dense<0.000000e+00> : vector<52x36xf32>
    %2 = tpu.matmul %0, %1, %cst {dimension_numbers = #tpu.dot_dimension_numbers<[1], [0], [0], [1], [0, 0, 1, 1], [], []>} : vector<52x250xf32>, vector<250x36xf32>, vector<52x36xf32> -> vector<52x36xf32>
    %c0_3 = arith.constant 0 : index
    %c0_4 = arith.constant 0 : index
    %3 = vector.load %arg2[%c0_3, %c0_4] : memref<52x1xf32, #tpu.memory_space<vmem>>, vector<52x1xf32>
    %4 = vector.broadcast %3 : vector<52x1xf32> to vector<52x36xf32>
    %5 = arith.addf %2, %4 : vector<52x36xf32>
    %cst_5 = arith.constant 5.000000e-01 : f32
    %6 = vector.broadcast %cst_5 : f32 to vector<52x36xf32>
    %7 = arith.mulf %5, %6 : vector<52x36xf32>
    %8 = arith.mulf %5, %5 : vector<52x36xf32>
    %9 = arith.mulf %8, %5 : vector<52x36xf32>
    %cst_6 = arith.constant 4.471500e-02 : f32
    %10 = vector.broadcast %cst_6 : f32 to vector<52x36xf32>
    %11 = arith.mulf %9, %10 : vector<52x36xf32>
    %12 = arith.addf %5, %11 : vector<52x36xf32>
    %cst_7 = arith.constant 0.797884583 : f32
    %13 = vector.broadcast %cst_7 : f32 to vector<52x36xf32>
    %14 = arith.mulf %12, %13 : vector<52x36xf32>
    %15 = math.tanh %14 : vector<52x36xf32>
    %cst_8 = arith.constant 1.000000e+00 : f32
    %16 = vector.broadcast %cst_8 : f32 to vector<52x36xf32>
    %17 = arith.addf %15, %16 : vector<52x36xf32>
    %18 = arith.mulf %7, %17 : vector<52x36xf32>
    %c0_9 = arith.constant 0 : index
    %c0_10 = arith.constant 0 : index
    %19 = vector.load %arg3[%c0_9, %c0_10] : memref<52x36xf32, #tpu.memory_space<vmem>>, vector<52x36xf32>
    tpu.vector_store %arg3[%c0_9, %c0_10], %18 {strides = array<i32>} : memref<52x36xf32, #tpu.memory_space<vmem>>, vector<52x36xf32>,
    return
  }
}

</mosaic_0001>

<bundles_post_ra>
// kernel: conv2d_gelu_pallas.1
= control target key start
LH: loop header
LB: loop body
LE: loop exit
PB: predicated region body
PF: predicated region fallthrough
CT: control target
= control target key end

     0   :  { %vm124_vm0 = vcmask 1041408   ;;  %vm102_vm1 = vcmask 998400   ;;  %v338_v37 = vmov 0   ;;  %vm267_vm2 = vcmask 293888   ;;  %s552_s1 = inlined_call_operand.vmem [shape: f32[250,36], index: 1, kind: input, shape index: {}]   ;;  %s553_s0 = inlined_call_operand.vmem [shape: f32[52,250], index: 0, kind: input, shape index: {}]   ;;  %s554_s2 = inlined_call_operand.vmem [shape: f32[52,1], index: 2, kind: input, shape index: {}]   ;;  %s555_s3 = inlined_call_operand.vmem [shape: f32[52,36], index: 3, kind: output, shape index: {}]  }
   0x1   :  { %v43_v0 = vld [vmem:[%s552_s1 + $0x78] sm:$0xff]  ;;  %v42_v2 = vld [vmem:[%s552_s1 + $0x70] sm:$0xff]  ;;  %v41_v4 = vld [vmem:[%s552_s1 + $0x68] sm:$0xff]  ;;  %322 = vset.pattern.permute.xlu1 %v338_v37  ;;  %321 = vset.pattern.permute.xlu0 %v338_v37  ;;  %vm274_vm3 = vcmask 289792  }
   0x2   :  { %v59_v1 = vld [vmem:[%s552_s1 + $0xf8] sm:$0x3]  ;;  %128 = vmatpush.msra.mxu0 %v43_v0  ;;  %288 = vmatpush.msra.mxu2 %v43_v0  ;;  %v58_v3 = vld [vmem:[%s552_s1 + $0xf0] sm:$0xff]  ;;  %v57_v5 = vld [vmem:[%s552_s1 + $0xe8] sm:$0xff] }
   0x3   :  { %280 = vmatpush.msk.msra.mxu1 %vm124_vm0, %v59_v1  ;;  %304 = vmatpush.msk.msra.mxu3 %vm124_vm0, %v59_v1  ;;  %v40_v6 = vld [vmem:[%s552_s1 + $0x60] sm:$0xff]  ;;  %v39_v8 = vld [vmem:[%s552_s1 + $0x58] sm:$0xff]  ;;  %v38_v10 = vld [vmem:[%s552_s1 + $0x50] sm:$0xff] }
   0x4   :  { %129 = vmatpush.msra.mxu0 %v42_v2  ;;  %289 = vmatpush.msra.mxu2 %v42_v2  ;;  %v56_v7 = vld [vmem:[%s552_s1 + $0xe0] sm:$0xff]  ;;  %v55_v9 = vld [vmem:[%s552_s1 + $0xd8] sm:$0xff]  ;;  %v54_v11 = vld [vmem:[%s552_s1 + $0xd0] sm:$0xff] }
   0x5   :  { %167 = vmatpush.msra.mxu1 %v58_v3  ;;  %305 = vmatpush.msra.mxu3 %v58_v3  ;;  %v37_v12 = vld [vmem:[%s552_s1 + $0x48] sm:$0xff]  ;;  %v36_v14 = vld [vmem:[%s552_s1 + $0x40] sm:$0xff]  ;;  %v35_v16 = vld [vmem:[%s552_s1 + $0x38] sm:$0xff] }
   0x6   :  { %130 = vmatpush.msra.mxu0 %v41_v4  ;;  %290 = vmatpush.msra.mxu2 %v41_v4  ;;  %v53_v13 = vld [vmem:[%s552_s1 + $0xc8] sm:$0xff]  ;;  %v52_v15 = vld [vmem:[%s552_s1 + $0xc0] sm:$0xff]  ;;  %v51_v17 = vld [vmem:[%s552_s1 + $0xb8] sm:$0xff] }
   0x7   :  { %168 = vmatpush.msra.mxu1 %v57_v5  ;;  %306 = vmatpush.msra.mxu3 %v57_v5  ;;  %v34_v18 = vld [vmem:[%s552_s1 + $0x30] sm:$0xff]  ;;  %v33_v20 = vld [vmem:[%s552_s1 + $0x28] sm:$0xff]  ;;  %v32_v22 = vld [vmem:[%s552_s1 + $0x20] sm:$0xff] }
   0x8   :  { %131 = vmatpush.msra.mxu0 %v40_v6  ;;  %291 = vmatpush.msra.mxu2 %v40_v6  ;;  %v50_v19 = vld [vmem:[%s552_s1 + $0xb0] sm:$0xff]  ;;  %v49_v21 = vld [vmem:[%s552_s1 + $0xa8] sm:$0xff]  ;;  %v48_v23 = vld [vmem:[%s552_s1 + $0xa0] sm:$0xff] }
   0x9   :  { %169 = vmatpush.msra.mxu1 %v56_v7  ;;  %307 = vmatpush.msra.mxu3 %v56_v7  ;;  %v31_v24 = vld [vmem:[%s552_s1 + $0x18] sm:$0xff]  ;;  %v30_v26 = vld [vmem:[%s552_s1 + $0x10] sm:$0xff]  ;;  %v29_v28 = vld [vmem:[%s552_s1 + $0x8] sm:$0xff] }
   0xa   :  { %132 = vmatpush.msra.mxu0 %v39_v8  ;;  %292 = vmatpush.msra.mxu2 %v39_v8  ;;  %v47_v25 = vld [vmem:[%s552_s1 + $0x98] sm:$0xff]  ;;  %v46_v27 = vld [vmem:[%s552_s1 + $0x90] sm:$0xff]  ;;  %v45_v29 = vld [vmem:[%s552_s1 + $0x88] sm:$0xff] }
   0xb   :  { %170 = vmatpush.msra.mxu1 %v55_v9  ;;  %308 = vmatpush.msra.mxu3 %v55_v9  ;;  %v28_v30 = vld [vmem:[%s552_s1] sm:$0xff]  ;;  %v20_v33 = vld [vmem:[%s553_s0 + $0x30] sm:$0xff]  ;;  %v15_v34 = vld [vmem:[%s553_s0 + $0x8] sm:$0xff] }
   0xc   :  { %133 = vmatpush.msra.mxu0 %v38_v10  ;;  %293 = vmatpush.msra.mxu2 %v38_v10  ;;  %v44_v31 = vld [vmem:[%s552_s1 + $0x80] sm:$0xff]  ;;  %v62_v35 = vld [vmem:[%s554_s2 + $0x10] sm:$0xff]  ;;  %v23_v38 = vld [vmem:[%s553_s0 + $0x48] sm:$0xff] }
   0xd   :  { %171 = vmatpush.msra.mxu1 %v54_v11  ;;  %309 = vmatpush.msra.mxu3 %v54_v11  ;;  %v14_v32 = vld [vmem:[%s553_s0] sm:$0xff]  ;;  %v16_v40 = vld [vmem:[%s553_s0 + $0x10] sm:$0xff]  ;;  %v17_v42 = vld [vmem:[%s553_s0 + $0x18] sm:$0xff] }
   0xe   :  { %134 = vmatpush.msra.mxu0 %v37_v12  ;;  %294 = vmatpush.msra.mxu2 %v37_v12  ;;  %v60_v36 = vld [vmem:[%s554_s2] sm:$0xff]  ;;  %v63_v43 = vld [vmem:[%s554_s2 + $0x18] sm:$0xff]  ;;  %v61_v44 = vld [vmem:[%s554_s2 + $0x8] sm:$0xff] }
   0xf   :  { %172 = vmatpush.msra.mxu1 %v53_v13  ;;  %310 = vmatpush.msra.mxu3 %v53_v13  ;;  %v64_v39 = vld [vmem:[%s554_s2 + $0x20] sm:$0xff]  ;;  %v25_v45 = vld [vmem:[%s553_s0 + $0x58] sm:$0xff]  ;;  %v65_v46 = vld [vmem:[%s554_s2 + $0x28] sm:$0xff] }
  0x10   :  { %135 = vmatpush.msra.mxu0 %v36_v14  ;;  %295 = vmatpush.msra.mxu2 %v36_v14  ;;  %v22_v41 = vld [vmem:[%s553_s0 + $0x40] sm:$0xff]  ;;  %v24_v48 = vld [vmem:[%s553_s0 + $0x50] sm:$0xff]  ;;  %v19_v49 = vld [vmem:[%s553_s0 + $0x28] sm:$0xff] }
  0x11   :  { %173 = vmatpush.msra.mxu1 %v52_v15  ;;  %311 = vmatpush.msra.mxu3 %v52_v15  ;;  %v18_v47 = vld [vmem:[%s553_s0 + $0x20] sm:$0xff]  ;;  %v66_v50 = vld [vmem:[%s554_s2 + $0x30] sm:$0xf]  ;;  %v27_v51 = vld [vmem:[%s553_s0 + $0x68] sm:$0xf] }
  0x12   :  { %136 = vmatpush.msra.mxu0 %v35_v16  ;;  %296 = vmatpush.msra.mxu2 %v35_v16  ;;  %v26_v52 = vld [vmem:[%s553_s0 + $0x60] sm:$0xf]  ;;  %v21_v53 = vld [vmem:[%s553_s0 + $0x38] sm:$0xff] }
  0x13   :  { %174 = vmatpush.msra.mxu1 %v51_v17  ;;  %312 = vmatpush.msra.mxu3 %v51_v17 }
  0x14   :  { %137 = vmatpush.msra.mxu0 %v34_v18  ;;  %297 = vmatpush.msra.mxu2 %v34_v18 }
  0x15   :  { %175 = vmatpush.msra.mxu1 %v50_v19  ;;  %313 = vmatpush.msra.mxu3 %v50_v19 }
  0x16   :  { %138 = vmatpush.msra.mxu0 %v33_v20  ;;  %298 = vmatpush.msra.mxu2 %v33_v20 }
  0x17   :  { %176 = vmatpush.msra.mxu1 %v49_v21  ;;  %314 = vmatpush.msra.mxu3 %v49_v21 }
  0x18   :  { %139 = vmatpush.msra.mxu0 %v32_v22  ;;  %299 = vmatpush.msra.mxu2 %v32_v22 }
  0x19   :  { %177 = vmatpush.msra.mxu1 %v48_v23  ;;  %315 = vmatpush.msra.mxu3 %v48_v23 }
  0x1a   :  { %140 = vmatpush.msra.mxu0 %v31_v24  ;;  %300 = vmatpush.msra.mxu2 %v31_v24 }
  0x1b   :  { %178 = vmatpush.msra.mxu1 %v47_v25  ;;  %316 = vmatpush.msra.mxu3 %v47_v25 }
  0x1c   :  { %141 = vmatpush.msra.mxu0 %v30_v26  ;;  %301 = vmatpush.msra.mxu2 %v30_v26 }
  0x1d   :  { %179 = vmatpush.msra.mxu1 %v46_v27  ;;  %317 = vmatpush.msra.mxu3 %v46_v27 }
  0x1e   :  { %142 = vmatpush.msra.mxu0 %v29_v28  ;;  %302 = vmatpush.msra.mxu2 %v29_v28 }
  0x1f   :  { %180 = vmatpush.msra.mxu1 %v45_v29  ;;  %318 = vmatpush.msra.mxu3 %v45_v29 }
  0x20   :  { %143 = vmatpush.msra.mxu0 %v28_v30  ;;  %303 = vmatpush.msra.mxu2 %v28_v30 }
  0x21   :  { %181 = vmatpush.msra.mxu1 %v44_v31  ;;  %144 = vmatmul.f32.vlgmr.msra.gmra.mxu0 %v14_v32 }
  0x22   :  { %153 = vmatmul.f32.vlgmr.msra.gmra.mxu2 %v20_v33  ;;  %281 = vmatmul.msk.f32.vlgmr.msra.gmra.mxu1 %vm102_vm1, %v15_v34 }
  0x23   :  { %79 = vperm.xlu1 %322, %v62_v35   ;;  %69 = vperm.xlu0 %321, %v60_v36  }
  0x24   :  { %319 = vmatpush.msra.mxu3 %v44_v31  ;;  %323 = vset.pattern.permute.xlu2 %v338_v37 }
  0x25   :  { %285 = vmatmul.msk.f32.vlgmr.msra.gmra.mxu3 %vm102_vm1, %v23_v38  ;;  %89 = vperm.xlu2 %323, %v64_v39  }
  0x29   :  { %147 = vmatmul.f32.gmra.mxu0 %v16_v40 }
  0x2a   :  { %156 = vmatmul.f32.gmra.mxu2 %v22_v41  ;;  %282 = vmatmul.msk.f32.gmra.mxu1 %vm102_vm1, %v17_v42 }
  0x2b   :  { %84 = vperm.xlu1 %322, %v63_v43   ;;  %74 = vperm.xlu0 %321, %v61_v44  }
  0x2d   :  { %286 = vmatmul.msk.f32.gmra.mxu3 %vm102_vm1, %v25_v45  ;;  %94 = vperm.xlu2 %323, %v65_v46  }
  0x31   :  { %150 = vmatmul.f32.gmra.mxu0 %v18_v47 }
  0x32   :  { %159 = vmatmul.f32.gmra.mxu2 %v24_v48  ;;  %283 = vmatmul.msk.f32.gmra.mxu1 %vm102_vm1, %v19_v49 }
  0x33   :  { %99 = vperm.xlu0 %321, %v66_v50  }
  0x35   :  { %287 = vmatmul.msk.f32.gmra.mxu3 %vm102_vm1, %v27_v51 }
  0x3a   :  { %162 = vmatmul.f32.gmra.mxu2 %v26_v52  ;;  %284 = vmatmul.msk.f32.gmra.mxu1 %vm102_vm1, %v21_v53 }
  0x7f   :  { %v90_v3 = vpop.permute.xlu2 %89 }
  0x87   :  { %v95_v21 = vpop.permute.xlu2 %94 }
  0x95   :  { %v70_v54 = vpop.permute.xlu0 %69  ;;  %v80_v4 = vpop.permute.xlu1 %79 }
  0x9d   :  { %v75_v62 = vpop.permute.xlu0 %74  ;;  %v85_v23 = vpop.permute.xlu1 %84 }
  0x9e   :  { %v145_v55 = vpop.f32.mrf.mxu0 }
  0x9f   :  { %v146_v56 = vadd.f32 %v145_v55, %v70_v54  ;;  %v183_v57 = vpop.f32.mrf.mxu1 }
  0xa1   :  { %v184_v58 = vadd.f32 %v183_v57, %v146_v56 }
  0xa3   :  { %v211_v59 = vmul.f32 %v184_v58, %v184_v58  ;;  %v204_v27 = vmul.f32 0.5, %v184_v58 }
  0xa5   :  { %v218_v60 = vmul.f32 %v211_v59, %v184_v58  ;;  %v154_v61 = vpop.f32.mrf.mxu2  ;;  %v100_v49 = vpop.permute.xlu0 %99 }
  0xa6   :  { %v148_v63 = vpop.f32.mrf.mxu0  ;;  %v155_v33 = vadd.f32 %v154_v61, %v85_v23 }
  0xa7   :  { %v225_v0 = vmul.f32 0.044715, %v218_v60  ;;  %v149_v1 = vadd.f32 %v148_v63, %v75_v62  ;;  %v186_v2 = vpop.f32.mrf.mxu1 }
  0xa8   :  { %v195_v7 = vpop.f32.mrf.mxu3 }
  0xa9   :  { %v232_v5 = vadd.f32 %v225_v0, %v184_v58  ;;  %v187_v6 = vadd.f32 %v186_v2, %v149_v1 }
  0xab   :  { %v239_v8 = vmul.f32 0.7978846, %v232_v5  ;;  %v212_v9 = vmul.f32 %v187_v6, %v187_v6  ;;  %v205_v47 = vmul.f32 0.5, %v187_v6 }
  0xad   :  { %324 = vtanh.f32 %v239_v8  ;;  %v219_v10 = vmul.f32 %v212_v9, %v187_v6  ;;  %v157_v11 = vpop.f32.mrf.mxu2 }
  0xae   :  { %v158_v12 = vadd.f32 %v157_v11, %v90_v3  ;;  %v151_v13 = vpop.f32.mrf.mxu0 }
  0xaf   :  { %v226_v14 = vmul.f32 0.044715, %v219_v10  ;;  %v152_v15 = vadd.f32 %v151_v13, %v80_v4  ;;  %v189_v16 = vpop.f32.mrf.mxu1 }
  0xb0   :  { %v196_v17 = vadd.f32 %v195_v7, %v158_v12  ;;  %v198_v26 = vpop.f32.mrf.mxu3 }
  0xb1   :  { %v233_v18 = vadd.f32 %v226_v14, %v187_v6  ;;  %v190_v19 = vadd.f32 %v189_v16, %v152_v15 }
  0xb2   :  { %v215_v20 = vmul.f32 %v196_v17, %v196_v17  ;;  %v208_v1 = vmul.f32 0.5, %v196_v17 }
  0xb3   :  { %v325_v22 = vpop.eup %324  ;;  %v240_v24 = vmul.f32 0.7978846, %v233_v18  ;;  %v213_v25 = vmul.f32 %v190_v19, %v190_v19  ;;  %v206_v4 = vmul.f32 0.5, %v190_v19 }
  0xb4   :  { %v253_v28 = vadd.f32 1.0, %v325_v22  ;;  %v222_v29 = vmul.f32 %v215_v20, %v196_v17 }
  0xb5   :  { %326 = vtanh.f32 %v240_v24  ;;  %v220_v30 = vmul.f32 %v213_v25, %v190_v19  ;;  %v160_v31 = vpop.f32.mrf.mxu2 }
  0xb6   :  { %v260_v32 = vmul.f32 %v253_v28, %v204_v27  ;;  %v229_v34 = vmul.f32 0.044715, %v222_v29  ;;  %v161_v35 = vadd.f32 %v160_v31, %v95_v21 }
  0xb7   :  { %v227_v36 = vmul.f32 0.044715, %v220_v30  ;;  %v192_v37 = vpop.f32.mrf.mxu1 }
  0xb8   :  { %268 = vst.msk [vmem:[%s555_s3] sm:$0xff] %vm267_vm2, %v260_v32  ;;  %v236_v38 = vadd.f32 %v229_v34, %v196_v17  ;;  %v193_v39 = vadd.f32 %v192_v37, %v155_v33  ;;  %v199_v40 = vadd.f32 %v198_v26, %v161_v35  ;;  %v201_v53 = vpop.f32.mrf.mxu3 }
  0xb9   :  { %v234_v41 = vadd.f32 %v227_v36, %v190_v19 }
  0xba   :  { %v243_v42 = vmul.f32 0.7978846, %v236_v38  ;;  %v214_v43 = vmul.f32 %v193_v39, %v193_v39  ;;  %v216_v46 = vmul.f32 %v199_v40, %v199_v40  ;;  %v207_v14 = vmul.f32 0.5, %v193_v39 }
  0xbb   :  { %v327_v44 = vpop.eup %326  ;;  %v241_v45 = vmul.f32 0.7978846, %v234_v41  ;;  %v209_v16 = vmul.f32 0.5, %v199_v40 }
  0xbc   :  { %v254_v48 = vadd.f32 1.0, %v327_v44  ;;  %328 = vtanh.f32 %v243_v42  ;;  %v221_v50 = vmul.f32 %v214_v43, %v193_v39  ;;  %v223_v51 = vmul.f32 %v216_v46, %v199_v40 }
  0xbd   :  { %330 = vtanh.f32 %v241_v45  ;;  %v163_v52 = vpop.f32.mrf.mxu2 }
  0xbe   :  { %v261_v54 = vmul.f32 %v254_v48, %v205_v47  ;;  %v228_v55 = vmul.f32 0.044715, %v221_v50  ;;  %v164_v56 = vadd.f32 %v163_v52, %v100_v49  ;;  %v230_v57 = vmul.f32 0.044715, %v223_v51 }
  0xc0   :  { %269 = vst.msk [vmem:[%s555_s3 + $0x8] sm:$0xff] %vm267_vm2, %v261_v54  ;;  %v235_v58 = vadd.f32 %v228_v55, %v193_v39  ;;  %v202_v59 = vadd.f32 %v201_v53, %v164_v56  ;;  %v237_v60 = vadd.f32 %v230_v57, %v199_v40 }
  0xc2   :  { %v329_v61 = vpop.eup %328  ;;  %v242_v62 = vmul.f32 0.7978846, %v235_v58  ;;  %v217_v63 = vmul.f32 %v202_v59, %v202_v59  ;;  %v244_v3 = vmul.f32 0.7978846, %v237_v60  ;;  %v210_v21 = vmul.f32 0.5, %v202_v59 }
  0xc3   :  { %v331_v0 = vpop.eup %330  ;;  %v257_v2 = vadd.f32 1.0, %v329_v61 }
  0xc4   :  { %v255_v5 = vadd.f32 1.0, %v331_v0  ;;  %332 = vtanh.f32 %v242_v62  ;;  %v224_v6 = vmul.f32 %v217_v63, %v202_v59 }
  0xc5   :  { %v264_v7 = vmul.f32 %v257_v2, %v208_v1  ;;  %334 = vtanh.f32 %v244_v3 }
  0xc6   :  { %v262_v8 = vmul.f32 %v255_v5, %v206_v4  ;;  %v231_v9 = vmul.f32 0.044715, %v224_v6 }
  0xc7   :  { %272 = vst.msk [vmem:[%s555_s3 + $0x20] sm:$0xff] %vm267_vm2, %v264_v7 }
  0xc8   :  { %270 = vst.msk [vmem:[%s555_s3 + $0x10] sm:$0xff] %vm267_vm2, %v262_v8  ;;  %v238_v10 = vadd.f32 %v231_v9, %v202_v59 }
  0xca   :  { %v333_v11 = vpop.eup %332  ;;  %v245_v12 = vmul.f32 0.7978846, %v238_v10 }
  0xcb   :  { %v335_v13 = vpop.eup %334  ;;  %v256_v15 = vadd.f32 1.0, %v333_v11 }
  0xcc   :  { %v258_v17 = vadd.f32 1.0, %v335_v13  ;;  %336 = vtanh.f32 %v245_v12 }
  0xcd   :  { %v263_v18 = vmul.f32 %v256_v15, %v207_v14 }
  0xce   :  { %v265_v19 = vmul.f32 %v258_v17, %v209_v16 }
  0xcf   :  { %271 = vst.msk [vmem:[%s555_s3 + $0x18] sm:$0xff] %vm267_vm2, %v263_v18 }
  0xd0   :  { %273 = vst.msk [vmem:[%s555_s3 + $0x28] sm:$0xff] %vm267_vm2, %v265_v19 }
  0xd2   :  { %v337_v20 = vpop.eup %336 }
  0xd3   :  { %v259_v22 = vadd.f32 1.0, %v337_v20 }
  0xd5   :  { %v266_v23 = vmul.f32 %v259_v22, %v210_v21 }
  0xd7   :  { %275 = vst.msk [vmem:[%s555_s3 + $0x30] sm:$0xf] %vm274_vm3, %v266_v23 }

</bundles_post_ra>
